<compile_context>
chip_gen: v5e
topology: v5e:2x2
jax: 0.10.0
libtpu: 0.0.40
codegen_flags: <defaults>
</compile_context>

<pallas_src>
import jax
import jax.numpy as jnp
from jax import lax
from jax.experimental import pallas as pl
from jax.experimental.pallas import tpu as pltpu


def rbf_kernel(x_ref, c_ref, cnorm_ref, inv_sig_ref, wt_ref, b_ref, o_ref):
    """One batch tile of the forward pass, fully in VMEM.

    x_ref       : (TB, D)  f32   batch tile
    c_ref       : (R, D)   f32   RBF centers
    cnorm_ref   : (1, R)   f32   per-center squared norms (precomputed)
    inv_sig_ref : (1, R)   f32   1 / sigma^2               (precomputed)
    wt_ref      : (R, O)   f32   linear weight, pre-transposed
    b_ref       : (1, O)   f32   linear bias
    o_ref       : (TB, O)  f32
    """
    x = x_ref[...]                                    # (TB, D)
    c = c_ref[...]                                    # (R, D)

    # ||x||^2 per row (tiny VPU reduction over D).
    x_sq = jnp.sum(x * x, axis=-1, keepdims=True)     # (TB, 1)

    # Cross term on the MXU: contract D of x with D of c (no transpose made).
    cross = lax.dot_general(
        x, c,
        dimension_numbers=(((1,), (1,)), ((), ())),
        preferred_element_type=jnp.float32,
    )                                                  # (TB, R)

    # ||x - c||^2 = ||x||^2 - 2 x.c + ||c||^2 ; clamp cancellation noise.
    sq = x_sq - 2.0 * cross + cnorm_ref[...]           # (TB, R)
    sq = jnp.maximum(sq, 0.0)

    # Gaussian basis: exp(-||x-c||^2 / sigma^2) as a single mul + EUP exp.
    g = jnp.exp(-sq * inv_sig_ref[...])                # (TB, R)

    # nn.Linear: g @ W^T + b, with W^T already materialized as (R, O).
    out = jnp.dot(g, wt_ref[...], preferred_element_type=jnp.float32)
    o_ref[...] = (out + b_ref[...]).astype(o_ref.dtype)


def rbf_network(x, centers, sigmas, weight, bias, *, batch_tile=None):
    """Pallas wrapper.

    Parameters are preprocessed (free, at trace time): centers' squared norms,
    1/sigma^2 laid out lane-dense as (1, R), and the weight pre-transposed to
    (R, O).  The batch axis is tiled over a parallel grid; each grid step works
    on a (TB, D) slab that easily fits VMEM on v5e/v6e/v7x.
    """
    B, D = x.shape
    R = centers.shape[0]
    O = weight.shape[0]

    if batch_tile is None:
        batch_tile = B if B <= 128 else 128
    assert B % batch_tile == 0, "batch must be divisible by batch_tile"
    tb = batch_tile
    grid = (B // tb,)

    # Hoisted, batch-invariant parameter preprocessing.
    cnorm = jnp.sum(centers * centers, axis=-1).reshape(1, R).astype(x.dtype)
    inv_sig_sq = (1.0 / (sigmas.reshape(1, R) ** 2)).astype(x.dtype)
    wt = weight.T.astype(x.dtype)                      # (R, O), trace-time
    bias2d = bias.reshape(1, O).astype(x.dtype)

    vmem = pltpu.MemorySpace.VMEM
    return pl.pallas_call(
        rbf_kernel,
        out_shape=jax.ShapeDtypeStruct((B, O), x.dtype),
        grid=grid,
        in_specs=[
            pl.BlockSpec((tb, D), lambda i: (i, 0), memory_space=vmem),  # x tile
            pl.BlockSpec((R, D), lambda i: (0, 0), memory_space=vmem),   # centers
            pl.BlockSpec((1, R), lambda i: (0, 0), memory_space=vmem),   # ||c||^2
            pl.BlockSpec((1, R), lambda i: (0, 0), memory_space=vmem),   # 1/sigma^2
            pl.BlockSpec((R, O), lambda i: (0, 0), memory_space=vmem),   # W^T
            pl.BlockSpec((1, O), lambda i: (0, 0), memory_space=vmem),   # bias
        ],
        out_specs=pl.BlockSpec((tb, O), lambda i: (i, 0), memory_space=vmem),
        compiler_params=pltpu.CompilerParams(
            dimension_semantics=("parallel",),
        ),
    )(x, centers, cnorm, inv_sig_sq, wt, bias2d)


def rbf_network_reference(x, centers, sigmas, weight, bias):
    """Pure-JAX reference mirroring the PyTorch forward exactly."""
    diff = x[:, None, :] - centers[None, :, :]
    norm = jnp.linalg.norm(diff, axis=2)
    phi = norm ** 2 / (sigmas.T ** 2)
    g = jnp.exp(-phi)
    return g @ weight.T + bias


if __name__ == "__main__":
    # Small, deterministic problem sizes (2 grid steps over the batch axis).
    batch, input_dim, num_rbfs, output_dim = 64, 32, 128, 16

    key = jax.random.PRNGKey(0)
    kx, kc, ks, kw, kb = jax.random.split(key, 5)

    x = jax.random.normal(kx, (batch, input_dim), dtype=jnp.float32)

    # Parameters (module __init__ shapes; sigmas widened so the basis outputs
    # are non-degenerate and the comparison is meaningful).
    centers = jax.random.normal(kc, (num_rbfs, input_dim), dtype=jnp.float32)
    sigmas = 4.0 + 2.0 * jax.random.uniform(ks, (num_rbfs, 1), dtype=jnp.float32)
    bound = 1.0 / jnp.sqrt(num_rbfs)
    weight = jax.random.uniform(kw, (output_dim, num_rbfs), jnp.float32, -bound, bound)
    bias = jax.random.uniform(kb, (output_dim,), jnp.float32, -bound, bound)

    out = rbf_network(x, centers, sigmas, weight, bias, batch_tile=32)
    out = jax.block_until_ready(out)

    ref = rbf_network_reference(x, centers, sigmas, weight, bias)
    assert out.shape == (batch, output_dim)
    assert jnp.allclose(out, ref, atol=1e-4, rtol=1e-4), "mismatch vs reference"

    print("KERNEL_OK")
</pallas_src>

<mosaic_0001>
module attributes {stable_mosaic.version = 11 : i64} {
  func.func @rbf_kernel(%arg0: i32, %arg1: memref<32x32xf32, #tpu.memory_space<vmem>>, %arg2: memref<128x32xf32, #tpu.memory_space<vmem>>, %arg3: memref<1x128xf32, #tpu.memory_space<vmem>>, %arg4: memref<1x128xf32, #tpu.memory_space<vmem>>, %arg5: memref<128x16xf32, #tpu.memory_space<vmem>>, %arg6: memref<1x16xf32, #tpu.memory_space<vmem>>, %arg7: memref<32x16xf32, #tpu.memory_space<vmem>>) attributes {dimension_semantics = [#tpu.dimension_semantics<parallel>], iteration_bounds = array<i64: 2>, scalar_prefetch = 0 : i64, scratch_operands = 0 : i64, tpu.core_type = #tpu.core_type<tc>, window_params = [{transform_indices = @transform_0, window_bounds = array<i64: 32, 32>}, {pipeline_mode = #tpu.pipeline_mode<synchronous>, transform_indices = @transform_1, window_bounds = array<i64: 128, 32>}, {pipeline_mode = #tpu.pipeline_mode<synchronous>, transform_indices = @transform_2, window_bounds = array<i64: 1, 128>}, {pipeline_mode = #tpu.pipeline_mode<synchronous>, transform_indices = @transform_3, window_bounds = array<i64: 1, 128>}, {pipeline_mode = #tpu.pipeline_mode<synchronous>, transform_indices = @transform_4, window_bounds = array<i64: 128, 16>}, {pipeline_mode = #tpu.pipeline_mode<synchronous>, transform_indices = @transform_5, window_bounds = array<i64: 1, 16>}, {transform_indices = @transform_6, window_bounds = array<i64: 32, 16>}]} {
    %c0 = arith.constant 0 : index
    %c0_0 = arith.constant 0 : index
    %0 = vector.load %arg1[%c0, %c0_0] : memref<32x32xf32, #tpu.memory_space<vmem>>, vector<32x32xf32>
    %c0_1 = arith.constant 0 : index
    %c0_2 = arith.constant 0 : index
    %1 = vector.load %arg2[%c0_1, %c0_2] : memref<128x32xf32, #tpu.memory_space<vmem>>, vector<128x32xf32>
    %2 = arith.mulf %0, %0 : vector<32x32xf32>
    %cst = arith.constant dense<0.000000e+00> : vector<32xf32>
    %3 = vector.multi_reduction <add>, %2, %cst [1] : vector<32x32xf32> to vector<32xf32>
    %4 = vector.shape_cast %3 : vector<32xf32> to vector<32x1xf32>
    %cst_3 = arith.constant dense<0.000000e+00> : vector<32x128xf32>
    %5 = tpu.matmul %0, %1, %cst_3 {dimension_numbers = #tpu.dot_dimension_numbers<[1], [1], [0], [0], [0, 0, 1, 0], [], []>} : vector<32x32xf32>, vector<128x32xf32>, vector<32x128xf32> -> vector<32x128xf32>
    %cst_4 = arith.constant 2.000000e+00 : f32
    %6 = vector.broadcast %cst_4 : f32 to vector<32x128xf32>
    %7 = arith.mulf %6, %5 : vector<32x128xf32>
    %8 = vector.broadcast %4 : vector<32x1xf32> to vector<32x128xf32>
    %9 = arith.subf %8, %7 : vector<32x128xf32>
    %c0_5 = arith.constant 0 : index
    %c0_6 = arith.constant 0 : index
    %10 = vector.load %arg3[%c0_5, %c0_6] : memref<1x128xf32, #tpu.memory_space<vmem>>, vector<1x128xf32>
    %11 = vector.broadcast %10 : vector<1x128xf32> to vector<32x128xf32>
    %12 = arith.addf %9, %11 : vector<32x128xf32>
    %cst_7 = arith.constant 0.000000e+00 : f32
    %13 = vector.broadcast %cst_7 : f32 to vector<32x128xf32>
    %14 = arith.maximumf %12, %13 : vector<32x128xf32>
    %cst_8 = arith.constant 0.000000e+00 : f32
    %15 = vector.broadcast %cst_8 : f32 to vector<32x128xf32>
    %16 = arith.subf %15, %14 : vector<32x128xf32>
    %c0_9 = arith.constant 0 : index
    %c0_10 = arith.constant 0 : index
    %17 = vector.load %arg4[%c0_9, %c0_10] : memref<1x128xf32, #tpu.memory_space<vmem>>, vector<1x128xf32>
    %18 = vector.broadcast %17 : vector<1x128xf32> to vector<32x128xf32>
    %19 = arith.mulf %16, %18 : vector<32x128xf32>
    %20 = math.exp %19 : vector<32x128xf32>
    %c0_11 = arith.constant 0 : index
    %c0_12 = arith.constant 0 : index
    %21 = vector.load %arg5[%c0_11, %c0_12] : memref<128x16xf32, #tpu.memory_space<vmem>>, vector<128x16xf32>
    %cst_13 = arith.constant dense<0.000000e+00> : vector<32x16xf32>
    %22 = tpu.matmul %20, %21, %cst_13 {dimension_numbers = #tpu.dot_dimension_numbers<[1], [0], [0], [1], [0, 0, 1, 1], [], []>} : vector<32x128xf32>, vector<128x16xf32>, vector<32x16xf32> -> vector<32x16xf32>
    %c0_14 = arith.constant 0 : index
    %c0_15 = arith.constant 0 : index
    %23 = vector.load %arg6[%c0_14, %c0_15] : memref<1x16xf32, #tpu.memory_space<vmem>>, vector<1x16xf32>
    %24 = vector.broadcast %23 : vector<1x16xf32> to vector<32x16xf32>
    %25 = arith.addf %22, %24 : vector<32x16xf32>
    %c0_16 = arith.constant 0 : index
    %c0_17 = arith.constant 0 : index
    %26 = vector.load %arg7[%c0_16, %c0_17] : memref<32x16xf32, #tpu.memory_space<vmem>>, vector<32x16xf32>
    tpu.vector_store %arg7[%c0_16, %c0_17], %25 {strides = array<i32>} : memref<32x16xf32, #tpu.memory_space<vmem>>, vector<32x16xf32>,
    return
  }
  func.func @transform_0(%arg0: i32) -> (i32, i32) {
    %c0_i32 = arith.constant 0 : i32
    %c0_i32_0 = arith.constant 0 : i32
    return %arg0, %c0_i32 : i32, i32
  }
  func.func @transform_1(%arg0: i32) -> (i32, i32) {
    %c0_i32 = arith.constant 0 : i32
    %c0_i32_0 = arith.constant 0 : i32
    %c0_i32_1 = arith.constant 0 : i32
    return %c0_i32, %c0_i32_0 : i32, i32
  }
  func.func @transform_2(%arg0: i32) -> (i32, i32) {
    %c0_i32 = arith.constant 0 : i32
    %c0_i32_0 = arith.constant 0 : i32
    %c0_i32_1 = arith.constant 0 : i32
    return %c0_i32, %c0_i32_0 : i32, i32
  }
  func.func @transform_3(%arg0: i32) -> (i32, i32) {
    %c0_i32 = arith.constant 0 : i32
    %c0_i32_0 = arith.constant 0 : i32
    %c0_i32_1 = arith.constant 0 : i32
    return %c0_i32, %c0_i32_0 : i32, i32
  }
  func.func @transform_4(%arg0: i32) -> (i32, i32) {
    %c0_i32 = arith.constant 0 : i32
    %c0_i32_0 = arith.constant 0 : i32
    %c0_i32_1 = arith.constant 0 : i32
    return %c0_i32, %c0_i32_0 : i32, i32
  }
  func.func @transform_5(%arg0: i32) -> (i32, i32) {
    %c0_i32 = arith.constant 0 : i32
    %c0_i32_0 = arith.constant 0 : i32
    %c0_i32_1 = arith.constant 0 : i32
    return %c0_i32, %c0_i32_0 : i32, i32
  }
  func.func @transform_6(%arg0: i32) -> (i32, i32) {
    %c0_i32 = arith.constant 0 : i32
    %c0_i32_0 = arith.constant 0 : i32
    return %arg0, %c0_i32 : i32, i32
  }
}

</mosaic_0001>

<bundles_post_ra>
// kernel: tpu_custom_call.1
= control target key start
LH: loop header
LB: loop body
LE: loop exit
PB: predicated region body
PF: predicated region fallthrough
CT: control target
= control target key end

     0   :  { %s656_s21 = smov 0   ;;  %s841_s0 = inlined_call_operand.vmem [shape: f32[64,32], index: 0, kind: input, shape index: {}]   ;;  %s842_s1 = inlined_call_operand.vmem [shape: f32[128,32], index: 1, kind: input, shape index: {}]   ;;  %s843_s2 = inlined_call_operand.vmem [shape: f32[1,128], index: 2, kind: input, shape index: {}]   ;;  %s844_s3 = inlined_call_operand.vmem [shape: f32[1,128], index: 3, kind: input, shape index: {}]   ;;  %s845_s4 = inlined_call_operand.vmem [shape: f32[128,16], index: 4, kind: input, shape index: {}]   ;;  %s846_s5 = inlined_call_operand.vmem [shape: f32[1,16], index: 5, kind: input, shape index: {}]   ;;  %s847_s6 = inlined_call_operand.vmem [shape: f32[64,16], index: 6, kind: output, shape index: {}]  }
   0x1 LB: > { %s531_s22 = sadd.s32 4294967295, %s619_s21   ;;  %p535_p0 = scmp.ge.s32.totalorder %s619_s21, 1  ;;  %s619_s21 = sphi %s656_s21, %s16_s21  }
   0x2   : > { %p213_p1 = scmp.lt.s32.totalorder %s619_s21, 3 }
   0x4   : > { %p214_p2 = pnand %p535_p0, %p213_p1 }
   0x5   : > { %s536_s9 = sshll.u32 (!%p214_p2), %s531_s22, 2 }
   0x6   : > { %217 = sbr.rel (%p214_p2) target bundleno = 375 (0x177), region = 44  ;;  %p244_p3 = scmp.lt.s32.totalorder (!%p214_p2), %s536_s9, 7 }
   0xb   : > { %v274_v0 = vld [vmem:[%s842_s1 + $0x78] sm:$0xff]  ;;  %vm279_vm0 = vcmask 261120   ;;  %v273_v1 = vld [vmem:[%s842_s1 + $0x70] sm:$0xff]  ;;  %v272_v2 = vld [vmem:[%s842_s1 + $0x68] sm:$0xff]  ;;  %s849_s9 = smov (!%p244_p3, %s536_s9), 7  ;;  %vm470_vm1 = vcmask 130048  }
   0xc   : > { %540 = vmatpush.xpose.msk.msra.mxu0 %vm279_vm0, %v274_v0  ;;  %562 = vmatpush.xpose.msk.msra.mxu2 %vm279_vm0, %v274_v0  ;;  %v271_v3 = vld [vmem:[%s842_s1 + $0x60] sm:$0xff]  ;;  %v270_v4 = vld [vmem:[%s842_s1 + $0x58] sm:$0xff]  ;;  %v269_v5 = vld [vmem:[%s842_s1 + $0x50] sm:$0xff]  ;;  %s537_s16 = sshll.u32 %s849_s9, 3 }
   0xd   : > { %563 = vmatpush.xpose.msk.msra.mxu3 %vm279_vm0, %v274_v0  ;;  %v268_v6 = vld [vmem:[%s842_s1 + $0x48] sm:$0xff]  ;;  %v267_v7 = vld [vmem:[%s842_s1 + $0x40] sm:$0xff]  ;;  %s247_s19 = scalar_lea.vmem %s841_s0, %s537_s16  ;;  %v266_v8 = vld [vmem:[%s842_s1 + $0x38] sm:$0xff]  ;;  %s253_s12 = scalar_lea.vmem %s847_s6, %s537_s16 }
   0xe   : > { %v255_v9 = vld [vmem:[%s247_s19] sm:$0xff]  ;;  %v265_v11 = vld [vmem:[%s842_s1 + $0x30] sm:$0xff]  ;;  %v264_v13 = vld [vmem:[%s842_s1 + $0x28] sm:$0xff] }
   0xf   : > { %v275_v10 = vmul.f32 %v255_v9, %v255_v9  ;;  %v256_v14 = vld [vmem:[%s247_s19 + $0x8] sm:$0xff]  ;;  %v257_v15 = vld [vmem:[%s247_s19 + $0x10] sm:$0xff]  ;;  %v436_v18 = vld [vmem:[%s845_s4 + $0x78] sm:$0xff] }
  0x10   : > { %541 = vmatpush.xpose.msk.msra.mxu0 %vm279_vm0, %v273_v1  ;;  %564 = vmatpush.xpose.msk.msra.mxu2 %vm279_vm0, %v273_v1  ;;  %v276_v16 = vmul.f32 %v256_v14, %v256_v14  ;;  %v277_v17 = vmul.f32 %v257_v15, %v257_v15  ;;  %v263_v19 = vld [vmem:[%s842_s1 + $0x20] sm:$0xff]  ;;  %v435_v22 = vld [vmem:[%s845_s4 + $0x70] sm:$0xff]  ;;  %v258_v23 = vld [vmem:[%s247_s19 + $0x18] sm:$0xff] }
  0x11   : > { %565 = vmatpush.xpose.msk.msra.mxu3 %vm279_vm0, %v273_v1  ;;  %v280_v12 = vsel %vm279_vm0, %v275_v10, 0.0  ;;  %441 = vmatpush.msra.mxu1 %v436_v18  ;;  %v278_v24 = vmul.f32 %v258_v23, %v258_v23  ;;  %v434_v25 = vld [vmem:[%s845_s4 + $0x68] sm:$0xff]  ;;  %v262_v26 = vld [vmem:[%s842_s1 + $0x18] sm:$0xff]  ;;  %v433_v27 = vld [vmem:[%s845_s4 + $0x60] sm:$0xff] }
  0x12   : > { %281 = vadd.xlane.f32.xlu0 %v280_v12  ;;  %v283_v20 = vsel %vm279_vm0, %v276_v16, 0.0  ;;  %v286_v21 = vsel %vm279_vm0, %v277_v17, 0.0  ;;  %v432_v29 = vld [vmem:[%s845_s4 + $0x58] sm:$0xff]  ;;  %v261_v30 = vld [vmem:[%s842_s1 + $0x10] sm:$0xff]  ;;  %v260_v31 = vld [vmem:[%s842_s1 + $0x8] sm:$0xff] }
  0x13   : > { %287 = vadd.xlane.f32.xlu1 %v286_v21  ;;  %442 = vmatpush.msra.mxu1 %v435_v22  ;;  %v289_v28 = vsel %vm279_vm0, %v278_v24, 0.0  ;;  %v259_v32 = vld [vmem:[%s842_s1] sm:$0xff]  ;;  %v431_v33 = vld [vmem:[%s845_s4 + $0x50] sm:$0xff]  ;;  %v430_v34 = vld [vmem:[%s845_s4 + $0x48] sm:$0xff] }
  0x14   : > { %542 = vmatpush.xpose.msk.msra.mxu0 %vm279_vm0, %v272_v2  ;;  %566 = vmatpush.xpose.msk.msra.mxu2 %vm279_vm0, %v272_v2  ;;  %v429_v35 = vld [vmem:[%s845_s4 + $0x40] sm:$0xff]  ;;  %v428_v36 = vld [vmem:[%s845_s4 + $0x38] sm:$0xff]  ;;  %v427_v37 = vld [vmem:[%s845_s4 + $0x30] sm:$0xff] }
  0x15   : > { %567 = vmatpush.xpose.msk.msra.mxu3 %vm279_vm0, %v272_v2  ;;  %443 = vmatpush.msra.mxu1 %v434_v25  ;;  %v426_v38 = vld [vmem:[%s845_s4 + $0x28] sm:$0xff]  ;;  %v425_v39 = vld [vmem:[%s845_s4 + $0x20] sm:$0xff]  ;;  %v424_v40 = vld [vmem:[%s845_s4 + $0x18] sm:$0xff] }
  0x16   : > { %v423_v41 = vld [vmem:[%s845_s4 + $0x10] sm:$0xff]  ;;  %v422_v42 = vld [vmem:[%s845_s4 + $0x8] sm:$0xff]  ;;  %v421_v43 = vld [vmem:[%s845_s4] sm:$0xff] }
  0x17   : > { %444 = vmatpush.msra.mxu1 %v433_v27  ;;  %v602_v47 = vld [vmem:[%s843_s2] ss:$0 sm:$0xff] }
  0x18   : > { %543 = vmatpush.xpose.msk.msra.mxu0 %vm279_vm0, %v271_v3  ;;  %568 = vmatpush.xpose.msk.msra.mxu2 %vm279_vm0, %v271_v3  ;;  %v603_v53 = vld [vmem:[%s844_s3] ss:$0 sm:$0xff] }
  0x19   : > { %569 = vmatpush.xpose.msk.msra.mxu3 %vm279_vm0, %v271_v3  ;;  %445 = vmatpush.msra.mxu1 %v432_v29  ;;  %v604_v22 = vld [vmem:[%s846_s5] ss:$0 sm:$0xff] }
  0x1a   : > { %284 = vadd.xlane.f32.xlu0 %v283_v20 }
  0x1b   : > { %290 = vadd.xlane.f32.xlu1 %v289_v28  ;;  %446 = vmatpush.msra.mxu1 %v431_v33 }
  0x1c   : > { %544 = vmatpush.xpose.msk.msra.mxu0 %vm279_vm0, %v270_v4  ;;  %570 = vmatpush.xpose.msk.msra.mxu2 %vm279_vm0, %v270_v4 }
  0x1d   : > { %571 = vmatpush.xpose.msk.msra.mxu3 %vm279_vm0, %v270_v4  ;;  %447 = vmatpush.msra.mxu1 %v430_v34 }
  0x1f   : > { %448 = vmatpush.msra.mxu1 %v429_v35 }
  0x20   : > { %545 = vmatpush.xpose.msk.msra.mxu0 %vm279_vm0, %v269_v5  ;;  %572 = vmatpush.xpose.msk.msra.mxu2 %vm279_vm0, %v269_v5 }
  0x21   : > { %573 = vmatpush.xpose.msk.msra.mxu3 %vm279_vm0, %v269_v5  ;;  %449 = vmatpush.msra.mxu1 %v428_v36 }
  0x23   : > { %450 = vmatpush.msra.mxu1 %v427_v37 }
  0x24   : > { %546 = vmatpush.xpose.msk.msra.mxu0 %vm279_vm0, %v268_v6  ;;  %574 = vmatpush.xpose.msk.msra.mxu2 %vm279_vm0, %v268_v6 }
  0x25   : > { %575 = vmatpush.xpose.msk.msra.mxu3 %vm279_vm0, %v268_v6  ;;  %451 = vmatpush.msra.mxu1 %v426_v38 }
  0x27   : > { %452 = vmatpush.msra.mxu1 %v425_v39 }
  0x28   : > { %547 = vmatpush.xpose.msk.msra.mxu0 %vm279_vm0, %v267_v7  ;;  %576 = vmatpush.xpose.msk.msra.mxu2 %vm279_vm0, %v267_v7 }
  0x29   : > { %577 = vmatpush.xpose.msk.msra.mxu3 %vm279_vm0, %v267_v7  ;;  %453 = vmatpush.msra.mxu1 %v424_v40 }
  0x2b   : > { %454 = vmatpush.msra.mxu1 %v423_v41 }
  0x2c   : > { %548 = vmatpush.xpose.msk.msra.mxu0 %vm279_vm0, %v266_v8  ;;  %578 = vmatpush.xpose.msk.msra.mxu2 %vm279_vm0, %v266_v8 }
  0x2d   : > { %579 = vmatpush.xpose.msk.msra.mxu3 %vm279_vm0, %v266_v8  ;;  %455 = vmatpush.msra.mxu1 %v422_v42 }
  0x2f   : > { %456 = vmatpush.msra.mxu1 %v421_v43 }
  0x30   : > { %549 = vmatpush.xpose.msk.msra.mxu0 %vm279_vm0, %v265_v11  ;;  %580 = vmatpush.xpose.msk.msra.mxu2 %vm279_vm0, %v265_v11 }
  0x31   : > { %581 = vmatpush.xpose.msk.msra.mxu3 %vm279_vm0, %v265_v11 }
  0x34   : > { %550 = vmatpush.xpose.msk.msra.mxu0 %vm279_vm0, %v264_v13  ;;  %582 = vmatpush.xpose.msk.msra.mxu2 %vm279_vm0, %v264_v13 }
  0x35   : > { %583 = vmatpush.xpose.msk.msra.mxu3 %vm279_vm0, %v264_v13 }
  0x38   : > { %551 = vmatpush.xpose.msk.msra.mxu0 %vm279_vm0, %v263_v19  ;;  %584 = vmatpush.xpose.msk.msra.mxu2 %vm279_vm0, %v263_v19 }
  0x39   : > { %585 = vmatpush.xpose.msk.msra.mxu3 %vm279_vm0, %v263_v19 }
  0x3c   : > { %552 = vmatpush.xpose.msk.msra.mxu0 %vm279_vm0, %v262_v26  ;;  %586 = vmatpush.xpose.msk.msra.mxu2 %vm279_vm0, %v262_v26 }
  0x3d   : > { %587 = vmatpush.xpose.msk.msra.mxu3 %vm279_vm0, %v262_v26 }
  0x40   : > { %553 = vmatpush.xpose.msk.msra.mxu0 %vm279_vm0, %v261_v30  ;;  %588 = vmatpush.xpose.msk.msra.mxu2 %vm279_vm0, %v261_v30 }
  0x41   : > { %589 = vmatpush.xpose.msk.msra.mxu3 %vm279_vm0, %v261_v30 }
  0x44   : > { %554 = vmatpush.xpose.msk.msra.mxu0 %vm279_vm0, %v260_v31  ;;  %590 = vmatpush.xpose.msk.msra.mxu2 %vm279_vm0, %v260_v31 }
  0x45   : > { %591 = vmatpush.xpose.msk.msra.mxu3 %vm279_vm0, %v260_v31 }
  0x48   : > { %555 = vmatpush.xpose.msk.msra.mxu0 %vm279_vm0, %v259_v32  ;;  %592 = vmatpush.xpose.msk.msra.mxu2 %vm279_vm0, %v259_v32 }
  0x49   : > { %593 = vmatpush.xpose.msk.msra.mxu3 %vm279_vm0, %v259_v32 }
  0x4b   : > { %556 = vmatmul.msk.f32.vlgmr.msra.gmra.mxu0 %vm279_vm0, %v255_v9  ;;  %557 = vmatmul.msk.f32.vlgmr.msra.gmra.mxu2 %vm279_vm0, %v256_v14 }
  0x4c   : > { %558 = vmatmul.msk.f32.vlgmr.msra.gmra.mxu3 %vm279_vm0, %v257_v15 }
  0x54   : > { %559 = vmatmul.msk.f32.gmra.mxu3 %vm279_vm0, %v258_v23 }
  0x85   : > { %v282_v44 = vpop.xlane.xlu0 %281 }
  0x86   : > { %v288_v50 = vpop.xlane.xlu1 %287 }
  0x8d   : > { %v285_v52 = vpop.xlane.xlu0 %284 }
  0x8e   : > { %v291_v5 = vpop.xlane.xlu1 %290 }
  0xc8   : > { %v369_v45 = vpop.f32.mrf.mxu0 }
  0xc9   : > { %v381_v46 = vmul.f32 2.0, %v369_v45 }
  0xcb   : > { %v385_v48 = vsub.f32 %v282_v44, %v381_v46 }
  0xcd   : > { %v393_v49 = vadd.f32 %v602_v47, %v385_v48 }
  0xce   : > { %v372_v51 = vpop.f32.mrf.mxu2 }
  0xcf   : > { %v397_v54 = vmax.f32 %v393_v49, 0.0  ;;  %v382_v55 = vmul.f32 2.0, %v372_v51  ;;  %v375_v56 = vpop.f32.mrf.mxu3 }
  0xd0   : > { %v383_v57 = vmul.f32 2.0, %v375_v56 }
  0xd1   : > { %v401_v58 = vsub.f32 0.0, %v397_v54  ;;  %v386_v59 = vsub.f32 %v285_v52, %v382_v55 }
  0xd2   : > { %v387_v60 = vsub.f32 %v288_v50, %v383_v57 }
  0xd3   : > { %v409_v61 = vmul.f32 %v603_v53, %v401_v58  ;;  %v394_v62 = vadd.f32 %v602_v47, %v386_v59 }
  0xd4   : > { %v395_v63 = vadd.f32 %v602_v47, %v387_v60 }
  0xd5   : > { %v413_v0 = vmul.f32 1.442695, %v409_v61  ;;  %v398_v1 = vmax.f32 %v394_v62, 0.0 }
  0xd6   : > { %v399_v2 = vmax.f32 %v395_v63, 0.0 }
  0xd7   : > { %v402_v3 = vsub.f32 0.0, %v398_v1  ;;  %605 = vpow2.f32 %v413_v0  ;;  %v378_v4 = vpop.f32.mrf.mxu3 }
  0xd8   : > { %v384_v6 = vmul.f32 2.0, %v378_v4  ;;  %v403_v8 = vsub.f32 0.0, %v399_v2 }
  0xd9   : > { %v410_v7 = vmul.f32 %v603_v53, %v402_v3 }
  0xda   : > { %v388_v9 = vsub.f32 %v291_v5, %v384_v6  ;;  %v411_v13 = vmul.f32 %v603_v53, %v403_v8 }
  0xdb   : > { %v415_v10 = vmul.f32 1.442695, %v410_v7 }
  0xdc   : > { %v396_v11 = vadd.f32 %v602_v47, %v388_v9  ;;  %v417_v15 = vmul.f32 1.442695, %v411_v13 }
  0xdd   : > { %v606_v12 = vpop.eup %605  ;;  %607 = vpow2.f32 %v415_v10 }
  0xde   : > { %457 = vmatmul.f32.vlgmr.msra.gmra.mxu1 %v606_v12  ;;  %v400_v14 = vmax.f32 %v396_v11, 0.0  ;;  %609 = vpow2.f32 %v417_v15 }
  0xe0   : > { %v404_v16 = vsub.f32 0.0, %v400_v14 }
  0xe2   : > { %v412_v18 = vmul.f32 %v603_v53, %v404_v16 }
  0xe3   : > { %v608_v17 = vpop.eup %607 }
  0xe4   : > { %v419_v19 = vmul.f32 1.442695, %v412_v18  ;;  %v610_v20 = vpop.eup %609 }
  0xe6   : > { %460 = vmatmul.f32.gmra.mxu1 %v608_v17  ;;  %611 = vpow2.f32 %v419_v19 }
  0xec   : > { %v612_v21 = vpop.eup %611 }
  0xee   : > { %463 = vmatmul.f32.gmra.mxu1 %v610_v20 }
  0xf6   : > { %466 = vmatmul.f32.gmra.mxu1 %v612_v21 }
 0x15b   : > { %v458_v23 = vpop.f32.mrf.mxu1 }
 0x15c   : > { %v459_v24 = vadd.f32 %v604_v22, %v458_v23 }
 0x15e   : > { %471 = vst.msk [vmem:[%s253_s12] sm:$0xff] %vm470_vm1, %v459_v24 }
 0x163   : > { %v461_v25 = vpop.f32.mrf.mxu1 }
 0x164   : > { %v462_v26 = vadd.f32 %v604_v22, %v461_v25 }
 0x166   : > { %472 = vst.msk [vmem:[%s253_s12 + $0x8] sm:$0xff] %vm470_vm1, %v462_v26 }
 0x16b   : > { %v464_v27 = vpop.f32.mrf.mxu1 }
 0x16c   : > { %v465_v28 = vadd.f32 %v604_v22, %v464_v27 }
 0x16e   : > { %473 = vst.msk [vmem:[%s253_s12 + $0x10] sm:$0xff] %vm470_vm1, %v465_v28 }
 0x173   : > { %v467_v29 = vpop.f32.mrf.mxu1 }
 0x174   : > { %v468_v30 = vadd.f32 %v604_v22, %v467_v29 }
 0x176   : > { %474 = vst.msk [vmem:[%s253_s12 + $0x18] sm:$0xff] %vm470_vm1, %v468_v30 }
 0x177 PF: > { %s16_s21 = sadd.s32 1, %s619_s21  }
 0x178   : > { %p13_p4 = scmp.ge.s32.totalorder %s16_s21, 4  }
 0x17a   :  { %15 = sbr.rel (!%p13_p4) target bundleno = 1 (0x1), region = 74 }

</bundles_post_ra>
